<compile_context>
chip_gen: v6e
topology: v6e:2x2x1
jax: 0.10.0
libtpu: 0.0.40
codegen_flags: <defaults>
</compile_context>

<pallas_src>
import functools

import jax
import jax.numpy as jnp
from jax.experimental import pallas as pl
from jax.experimental.pallas import tpu as pltpu


def _round_up(x, m):
    return (x + m - 1) // m * m


def _pick_tile(dim, cap):
    """Largest multiple of 128 that is <= cap and divides dim (dim % 128 == 0)."""
    t = min(cap, dim)
    t -= t % 128
    t = max(t, 128)
    while dim % t:
        t -= 128
    return t


def _residual_ff_kernel(x_lhs_ref, w_ref, b_ref, x_res_ref, o_ref, acc_ref):
    # x_lhs_ref: (tm, tk) bf16   w_ref: (tk, tn) bf16   b_ref: (1, tn) f32
    # x_res_ref: (tm, tn) f32    o_ref: (tm, tn)        acc_ref: (tm, tn) f32
    k = pl.program_id(2)

    @pl.when(k == 0)
    def _():
        acc_ref[...] = jnp.zeros_like(acc_ref)

    # bf16 MXU inputs, f32 accumulation.
    acc_ref[...] += jnp.dot(x_lhs_ref[...], w_ref[...],
                            preferred_element_type=jnp.float32)

    @pl.when(k == pl.num_programs(2) - 1)
    def _():
        h = acc_ref[...] + b_ref[...]            # bias is f32, row-broadcast
        h = jax.nn.gelu(h, approximate=True)     # tanh form -> EUP slot
        o_ref[...] = (h + x_res_ref[...].astype(jnp.float32)).astype(o_ref.dtype)


def residual_ff(x, w, b, *, tm_max=512, tn_max=512, tk_max=512,
                mxu_dtype=jnp.bfloat16):
    """x: [M, D], w: [D, D], b: [D]. Returns gelu(x @ w + b) + x.

    f32 math on the elementwise/residual path; bf16 MXU inputs with f32
    accumulation.
    """
    M, D = x.shape
    assert w.shape == (D, D) and b.shape == (D,)

    # ---- padding for lane density (D -> multiple of 128) and row tiling ----
    D_pad = _round_up(D, 128)
    tm = tm_max if M >= tm_max else _round_up(M, 8)
    M_pad = _round_up(M, tm)
    tn = _pick_tile(D_pad, tn_max)
    tk = _pick_tile(D_pad, tk_max)

    # Zero padding is semantics-preserving: padded K rows/cols contribute 0 to
    # the matmul, padded N cols see gelu(0) + 0 = 0 and are sliced off.
    # Pad + cast in one fused op each (the matmul operands go to bf16 here so
    # the kernel DMAs half the bytes for them).
    x_lhs = jnp.zeros((M_pad, D_pad), mxu_dtype).at[:M, :D].set(
        x.astype(mxu_dtype))
    w_p = jnp.zeros((D_pad, D_pad), mxu_dtype).at[:D, :D].set(
        w.astype(mxu_dtype))
    b_p = jnp.zeros((1, D_pad), jnp.float32).at[0, :D].set(
        b.astype(jnp.float32))
    x_res = jnp.zeros((M_pad, D_pad), x.dtype).at[:M, :D].set(x)

    grid = (M_pad // tm, D_pad // tn, D_pad // tk)

    # ---- explicit scoped-VMEM budget (double-buffered tiles + accumulator) ----
    mb = jnp.dtype(mxu_dtype).itemsize
    xb = x.dtype.itemsize
    vmem_bytes = (2 * tm * tk * mb       # x LHS tiles (bf16)
                  + 2 * tk * tn * mb     # weight slabs (bf16)
                  + 2 * tm * tn * xb     # x residual tiles (f32)
                  + 2 * 1 * tn * 4       # bias
                  + 2 * tm * tn * xb     # output tiles
                  + tm * tn * 4)         # f32 accumulator scratch
    vmem_limit = min(int(vmem_bytes * 1.5) + (4 << 20), 48 << 20)

    out_p = pl.pallas_call(
        _residual_ff_kernel,
        out_shape=jax.ShapeDtypeStruct((M_pad, D_pad), x.dtype),
        grid_spec=pltpu.PrefetchScalarGridSpec(
            num_scalar_prefetch=0,
            grid=grid,
            in_specs=[
                pl.BlockSpec((tm, tk), lambda i, j, k: (i, k)),   # x as matmul LHS
                pl.BlockSpec((tk, tn), lambda i, j, k: (k, j)),   # weight slab
                pl.BlockSpec((1, tn), lambda i, j, k: (0, j)),    # bias (f32)
                pl.BlockSpec((tm, tn), lambda i, j, k: (i, j)),   # x for residual add
            ],
            out_specs=pl.BlockSpec((tm, tn), lambda i, j, k: (i, j)),
            scratch_shapes=[pltpu.VMEM((tm, tn), jnp.float32)],
        ),
        compiler_params=pltpu.CompilerParams(
            # row tiles parallel, N tiles parallel (megacore), K reduction innermost
            dimension_semantics=("parallel", "parallel", "arbitrary"),
            vmem_limit_bytes=vmem_limit,
        ),
    )(x_lhs, w_p, b_p, x_res)

    if (M_pad, D_pad) != (M, D):
        out_p = out_p[:M, :D]
    return out_p


if __name__ == "__main__":
    batch, seq, hidden = 2, 8, 32
    key = jax.random.PRNGKey(0)
    kx, kw, kb = jax.random.split(key, 3)

    x = jax.random.normal(kx, (batch, seq, hidden), dtype=jnp.float32)
    # deterministic parameter init (synthetic; matches nn.Linear(hidden, hidden) shapes)
    w = jax.random.normal(kw, (hidden, hidden), dtype=jnp.float32) * 0.02
    b = jax.random.normal(kb, (hidden,), dtype=jnp.float32) * 0.02

    x2d = x.reshape(batch * seq, hidden)
    out = residual_ff(x2d, w, b).reshape(batch, seq, hidden)
    jax.block_until_ready(out)

    # pure-JAX reference (f32 exact-erf GELU); loosened tolerance covers the
    # bf16-MXU + tanh-GELU kernel path.
    ref = jax.nn.gelu(x2d @ w + b) + x2d
    err = float(jnp.max(jnp.abs(out.reshape(-1, hidden) - ref)))
    assert jnp.allclose(out.reshape(-1, hidden), ref, atol=2e-2, rtol=2e-2), err

    print("KERNEL_OK")
</pallas_src>

<mosaic_0001>
module attributes {stable_mosaic.version = 11 : i64} {
  func.func @_residual_ff_kernel(%arg0: i32, %arg1: i32, %arg2: i32, %arg3: memref<16x128xbf16, #tpu.memory_space<vmem>>, %arg4: memref<128x128xbf16, #tpu.memory_space<vmem>>, %arg5: memref<1x128xf32, #tpu.memory_space<vmem>>, %arg6: memref<16x128xf32, #tpu.memory_space<vmem>>, %arg7: memref<16x128xf32, #tpu.memory_space<vmem>>, %arg8: memref<16x128xf32, #tpu.memory_space<vmem>>) attributes {dimension_semantics = [#tpu.dimension_semantics<parallel>, #tpu.dimension_semantics<parallel>, #tpu.dimension_semantics<arbitrary>], iteration_bounds = array<i64: 1, 1, 1>, scalar_prefetch = 0 : i64, scratch_operands = 1 : i64, tpu.core_type = #tpu.core_type<tc>, window_params = [{transform_indices = @transform_0, window_bounds = array<i64: 16, 128>}, {transform_indices = @transform_1, window_bounds = array<i64: 128, 128>}, {transform_indices = @transform_2, window_bounds = array<i64: 1, 128>}, {transform_indices = @transform_3, window_bounds = array<i64: 16, 128>}, {transform_indices = @transform_4, window_bounds = array<i64: 16, 128>}]} {
    %c0_i32 = arith.constant 0 : i32
    %0 = arith.cmpi eq, %arg2, %c0_i32 : i32
    %1 = arith.extui %0 : i1 to i32
    %c0_i32_0 = arith.constant 0 : i32
    %2 = arith.cmpi ne, %1, %c0_i32_0 : i32
    scf.if %2 {
      %cst_10 = arith.constant 0.000000e+00 : f32
      %12 = vector.broadcast %cst_10 : f32 to vector<16x128xf32>
      %c0_11 = arith.constant 0 : index
      %c0_12 = arith.constant 0 : index
      %13 = vector.load %arg8[%c0_11, %c0_12] : memref<16x128xf32, #tpu.memory_space<vmem>>, vector<16x128xf32>
      tpu.vector_store %arg8[%c0_11, %c0_12], %12 {strides = array<i32>} : memref<16x128xf32, #tpu.memory_space<vmem>>, vector<16x128xf32>,
    } else {
    }
    %c0 = arith.constant 0 : index
    %c0_1 = arith.constant 0 : index
    %3 = vector.load %arg8[%c0, %c0_1] : memref<16x128xf32, #tpu.memory_space<vmem>>, vector<16x128xf32>
    %c0_2 = arith.constant 0 : index
    %c0_3 = arith.constant 0 : index
    %4 = vector.load %arg3[%c0_2, %c0_3] : memref<16x128xbf16, #tpu.memory_space<vmem>>, vector<16x128xbf16>
    %c0_4 = arith.constant 0 : index
    %c0_5 = arith.constant 0 : index
    %5 = vector.load %arg4[%c0_4, %c0_5] : memref<128x128xbf16, #tpu.memory_space<vmem>>, vector<128x128xbf16>
    %cst = arith.constant dense<0.000000e+00> : vector<16x128xf32>
    %6 = tpu.matmul %4, %5, %cst {dimension_numbers = #tpu.dot_dimension_numbers<[1], [0], [0], [1], [0, 0, 1, 1], [], []>} : vector<16x128xbf16>, vector<128x128xbf16>, vector<16x128xf32> -> vector<16x128xf32>
    %7 = arith.addf %3, %6 : vector<16x128xf32>
    %c0_6 = arith.constant 0 : index
    %c0_7 = arith.constant 0 : index
    %8 = vector.load %arg8[%c0_6, %c0_7] : memref<16x128xf32, #tpu.memory_space<vmem>>, vector<16x128xf32>
    tpu.vector_store %arg8[%c0_6, %c0_7], %7 {strides = array<i32>} : memref<16x128xf32, #tpu.memory_space<vmem>>, vector<16x128xf32>,
    %c0_i32_8 = arith.constant 0 : i32
    %9 = arith.cmpi eq, %arg2, %c0_i32_8 : i32
    %10 = arith.extui %9 : i1 to i32
    %c0_i32_9 = arith.constant 0 : i32
    %11 = arith.cmpi ne, %10, %c0_i32_9 : i32
    scf.if %11 {
      %c0_10 = arith.constant 0 : index
      %c0_11 = arith.constant 0 : index
      %12 = vector.load %arg8[%c0_10, %c0_11] : memref<16x128xf32, #tpu.memory_space<vmem>>, vector<16x128xf32>
      %c0_12 = arith.constant 0 : index
      %c0_13 = arith.constant 0 : index
      %13 = vector.load %arg5[%c0_12, %c0_13] : memref<1x128xf32, #tpu.memory_space<vmem>>, vector<1x128xf32>
      %14 = vector.broadcast %13 : vector<1x128xf32> to vector<16x128xf32>
      %15 = arith.addf %12, %14 : vector<16x128xf32>
      %16 = arith.mulf %15, %15 : vector<16x128xf32>
      %17 = arith.mulf %15, %16 : vector<16x128xf32>
      %cst_14 = arith.constant 4.471500e-02 : f32
      %18 = vector.broadcast %cst_14 : f32 to vector<16x128xf32>
      %19 = arith.mulf %18, %17 : vector<16x128xf32>
      %20 = arith.addf %15, %19 : vector<16x128xf32>
      %cst_15 = arith.constant 0.797884583 : f32
      %21 = vector.broadcast %cst_15 : f32 to vector<16x128xf32>
      %22 = arith.mulf %21, %20 : vector<16x128xf32>
      %23 = math.tanh %22 : vector<16x128xf32>
      %cst_16 = arith.constant 1.000000e+00 : f32
      %24 = vector.broadcast %cst_16 : f32 to vector<16x128xf32>
      %25 = arith.addf %24, %23 : vector<16x128xf32>
      %cst_17 = arith.constant 5.000000e-01 : f32
      %26 = vector.broadcast %cst_17 : f32 to vector<16x128xf32>
      %27 = arith.mulf %26, %25 : vector<16x128xf32>
      %28 = arith.mulf %15, %27 : vector<16x128xf32>
      %c0_18 = arith.constant 0 : index
      %c0_19 = arith.constant 0 : index
      %29 = vector.load %arg6[%c0_18, %c0_19] : memref<16x128xf32, #tpu.memory_space<vmem>>, vector<16x128xf32>
      %30 = arith.addf %28, %29 : vector<16x128xf32>
      %c0_20 = arith.constant 0 : index
      %c0_21 = arith.constant 0 : index
      %31 = vector.load %arg7[%c0_20, %c0_21] : memref<16x128xf32, #tpu.memory_space<vmem>>, vector<16x128xf32>
      tpu.vector_store %arg7[%c0_20, %c0_21], %30 {strides = array<i32>} : memref<16x128xf32, #tpu.memory_space<vmem>>, vector<16x128xf32>,
    } else {
    }
    return
  }
  func.func @transform_0(%arg0: i32, %arg1: i32, %arg2: i32) -> (i32, i32) {
    %c0_i32 = arith.constant 0 : i32
    return %arg0, %arg2 : i32, i32
  }
  func.func @transform_1(%arg0: i32, %arg1: i32, %arg2: i32) -> (i32, i32) {
    %c0_i32 = arith.constant 0 : i32
    return %arg2, %arg1 : i32, i32
  }
  func.func @transform_2(%arg0: i32, %arg1: i32, %arg2: i32) -> (i32, i32) {
    %c0_i32 = arith.constant 0 : i32
    %c0_i32_0 = arith.constant 0 : i32
    return %c0_i32, %arg1 : i32, i32
  }
  func.func @transform_3(%arg0: i32, %arg1: i32, %arg2: i32) -> (i32, i32) {
    %c0_i32 = arith.constant 0 : i32
    return %arg0, %arg1 : i32, i32
  }
  func.func @transform_4(%arg0: i32, %arg1: i32, %arg2: i32) -> (i32, i32) {
    %c0_i32 = arith.constant 0 : i32
    return %arg0, %arg1 : i32, i32
  }
}

</mosaic_0001>

<bundles_post_ra>
// kernel: tpu_custom_call.1
= control target key start
LH: loop header
LB: loop body
LE: loop exit
PB: predicated region body
PF: predicated region fallthrough
CT: control target
= control target key end

     0   :  { %9 = vsyncpa [#allocation4], 0  ;;  %s445_s0 = inlined_call_operand.hbm [shape: bf16[16,128], index: 0, kind: input, shape index: {}]   ;;  %s446_s1 = inlined_call_operand.hbm [shape: bf16[128,128], index: 1, kind: input, shape index: {}]   ;;  %s447_s2 = inlined_call_operand.vmem [shape: f32[1,128], index: 2, kind: input, shape index: {}]   ;;  %s448_s3 = inlined_call_operand.hbm [shape: f32[16,128], index: 3, kind: input, shape index: {}]   ;;  %s449_s4 = inlined_call_operand.hbm [shape: f32[16,128], index: 4, kind: output, shape index: {}]  }
   0x1   :  { %10 = vsyncpa [#allocation7], 0 }
   0x2   :  { %11 = vsyncpa [#allocation5], 0  ;;  %s389_s15 = smov [#allocation6]   ;;  %s390_s17 = smov [#allocation3]  }
   0x3   :  { %s29_s16 = sshll.u32 %s389_s15, 4  ;;  %s17_s18 = sshll.u32 %s390_s17, 4  ;;  %s30_s16 = int_to_ptr.vmem [resolvable:$true] %s29_s16  ;;  %s18_s18 = int_to_ptr.vmem [resolvable:$true] %s17_s18 }
   0x4   :  { %s311_s19 = scalar_lea.vmem %s30_s16, 1024  ;;  %p316_p1 = scmp.lt.s32.totalorder %s30_s16, %s30_s16 }
   0x5   :  { %p312_p0 = scmp.ne.s32.totalorder %s30_s16, %s311_s19  ;;  %p317_p2 = scmp.lt.s32.totalorder %s311_s19, %s311_s19 }
   0x7   :  { %p318_p3 = por %p317_p2, %p316_p1 }
   0x9   :  { %p319_p4 = pnand %p318_p3, %p312_p0 }
   0xb   :  { %322 = shalt.err (!%p319_p4)
}
   0xc   :  { %s391_s20 = smov 64   ;;  %s392_s21 = smov 4  }
   0xd   :  { %35 = dma.hbm_to_vmem [thread:$0]  %s446_s1, 1024, %s30_s16, [#allocation7], %s391_s20, %s391_s20, %s392_s21  }
   0xe   :  { %s331_s24 = scalar_lea.vmem %s18_s18, 128  ;;  %p336_p6 = scmp.lt.s32.totalorder %s18_s18, %s18_s18 }
   0xf   :  { %p332_p5 = scmp.ne.s32.totalorder %s18_s18, %s331_s24  ;;  %p337_p7 = scmp.lt.s32.totalorder %s331_s24, %s331_s24 }
  0x11   :  { %p338_p8 = por %p337_p7, %p336_p6 }
  0x13   :  { %p339_p9 = pnand %p338_p8, %p332_p5 }
  0x15   :  { %342 = shalt.err (!%p339_p9)
}
  0x16   :  { %23 = dma.hbm_to_vmem [thread:$0]  %s445_s0, 128, %s18_s18, [#allocation4], %s391_s20, %s391_s20, %s392_s21  }
  0x17   :  { %s393_s27 = smov [#allocation8]  }
  0x18   :  { %s43_s28 = sshll.u32 %s393_s27, 4  ;;  %s44_s28 = int_to_ptr.vmem [resolvable:$true] %s43_s28 }
  0x19   :  { %s351_s29 = scalar_lea.vmem %s44_s28, 256  ;;  %p356_p11 = scmp.lt.s32.totalorder %s44_s28, %s44_s28 }
  0x1a   :  { %p352_p10 = scmp.ne.s32.totalorder %s44_s28, %s351_s29  ;;  %p357_p12 = scmp.lt.s32.totalorder %s351_s29, %s351_s29 }
  0x1c   :  { %p358_p13 = por %p357_p12, %p356_p11 }
  0x1e   :  { %p359_p0 = pnand %p358_p13, %p352_p10 }
  0x20   :  { %362 = shalt.err (!%p359_p0)
}
  0x21   :  { %s394_s1 = smov 128   ;;  %s395_s30 = smov 8  }
  0x22   :  { %49 = dma.hbm_to_vmem [thread:$0]  %s448_s3, 256, %s44_s28, [#allocation7], %s394_s1, %s394_s1, %s395_s30  }
  0x23   :  { %383 = dma.done.wait [#allocation4], 128  }
  0x24   :  { %384 = vsyncadd [#allocation4], 4294967168 }
  0x25   :  { %385 = dma.done.wait [#allocation7], 1280  }
  0x26   :  { %386 = vsyncadd [#allocation7], 4294966016  ;;  %v396_v0 = vmov 0.0   ;;  %vm397_vm0 = vmmov 0   ;;  %v290_v1 = vld [vmem:[#allocation6 + $0x38] sm:$0xff]   ;;  %v291_v2 = vld [vmem:[#allocation6 + $0x30] sm:$0xff]  }
  0x27   :  { %260 = vmatprep.subr.bf16.mxu0 %v396_v0  ;;  %276 = vmatprep.mubr.msk.bf16.mxu0 %vm397_vm0, %v396_v0  ;;  %v292_v3 = vld [vmem:[#allocation6 + $0x28] sm:$0xff]   ;;  %v293_v4 = vld [vmem:[#allocation6 + $0x20] sm:$0xff]   ;;  %v294_v5 = vld [vmem:[#allocation6 + $0x18] sm:$0xff]  }
  0x28   :  { %261 = vmatpush3.bf16.msra.mxu0 %v290_v1  ;;  %v295_v6 = vld [vmem:[#allocation6 + $0x10] sm:$0xff]   ;;  %v296_v7 = vld [vmem:[#allocation6 + $0x8] sm:$0xff]   ;;  %v297_v8 = vld [vmem:[#allocation6] sm:$0xff]  }
  0x29   :  { %262 = vmatprep.subr.bf16.mxu0 %v396_v0  ;;  %v298_v9 = vld [vmem:[#allocation3] sm:$0xff]   ;;  %v217_v31 = vld [vmem:[#allocation8] sm:$0xff]  ;;  %v218_v36 = vld [vmem:[#allocation8 + $0x8] sm:$0xff] }
  0x2a   :  { %v250_v10 = vld [vmem:[%s447_s2] ss:$0 sm:$0xff]  ;;  %s398_s2 = smov [#allocation9]  }
  0x2b   :  { %s228_s7 = sshll.u32 %s398_s2, 4  ;;  %s229_s7 = int_to_ptr.vmem [resolvable:$true] %s228_s7 }
  0x2c   :  { %263 = vmatpush3.bf16.msra.mxu0 %v291_v2  ;;  %s363_s8 = scalar_lea.vmem %s229_s7, 256  ;;  %p368_p2 = scmp.lt.s32.totalorder %s229_s7, %s229_s7 }
  0x2d   :  { %264 = vmatprep.subr.bf16.mxu0 %v396_v0  ;;  %p364_p1 = scmp.ne.s32.totalorder %s229_s7, %s363_s8  ;;  %p369_p3 = scmp.lt.s32.totalorder %s363_s8, %s363_s8 }
  0x2f   :  { %p370_p4 = por %p369_p3, %p368_p2 }
  0x30   :  { %265 = vmatpush3.bf16.msra.mxu0 %v292_v3 }
  0x31   :  { %266 = vmatprep.subr.bf16.mxu0 %v396_v0  ;;  %p371_p5 = pnand %p370_p4, %p364_p1 }
  0x34   :  { %267 = vmatpush3.bf16.msra.mxu0 %v293_v4 }
  0x35   :  { %268 = vmatprep.subr.bf16.mxu0 %v396_v0 }
  0x38   :  { %269 = vmatpush3.bf16.msra.mxu0 %v294_v5 }
  0x39   :  { %270 = vmatprep.subr.bf16.mxu0 %v396_v0 }
  0x3c   :  { %271 = vmatpush3.bf16.msra.mxu0 %v295_v6 }
  0x3d   :  { %272 = vmatprep.subr.bf16.mxu0 %v396_v0 }
  0x40   :  { %273 = vmatpush3.bf16.msra.mxu0 %v296_v7 }
  0x41   :  { %274 = vmatprep.subr.bf16.mxu0 %v396_v0 }
  0x44   :  { %275 = vmatpush3.bf16.msra.mxu0 %v297_v8 }
  0x47   :  { %277 = vmatmul.mubr.bf16.vlgmr.msra.gmra.mxu0 %v298_v9 }
 0x107   :  { %v174_v11 = vpop.f32.mrf.mxu0 }
 0x108   :  { %v197_v12 = vadd.f32 %v250_v10, %v174_v11 }
 0x109   :  { %v278_v13 = vpop.f32.mrf.mxu0 }
 0x10a   :  { %v199_v14 = vmul.f32 %v197_v12, %v197_v12 }
 0x10b   :  { %v177_v15 = vpop.f32.mrf.mxu0 }
 0x10c   :  { %v201_v16 = vmul.f32 %v199_v14, %v197_v12  ;;  %v198_v17 = vadd.f32 %v250_v10, %v177_v15 }
 0x10d   :  { %v279_v18 = vpop.f32.mrf.mxu0 }
 0x10e   :  { %v203_v19 = vmul.f32 0.044715, %v201_v16  ;;  %v200_v20 = vmul.f32 %v198_v17, %v198_v17 }
 0x110   :  { %v205_v21 = vadd.f32 %v203_v19, %v197_v12  ;;  %v202_v22 = vmul.f32 %v200_v20, %v198_v17 }
 0x112   :  { %v207_v23 = vmul.f32 0.7978846, %v205_v21  ;;  %v204_v24 = vmul.f32 0.044715, %v202_v22 }
 0x114   :  { %299 = vtanh.f32 %v207_v23  ;;  %v206_v25 = vadd.f32 %v204_v24, %v198_v17 }
 0x116   :  { %v208_v26 = vmul.f32 0.7978846, %v206_v25 }
 0x118   :  { %301 = vtanh.f32 %v208_v26 }
 0x121   :  { %v300_v27 = vpop.eup %299 }
 0x122   :  { %v211_v28 = vadd.f32 1.0, %v300_v27 }
 0x124   :  { %v213_v29 = vmul.f32 0.5, %v211_v28 }
 0x125   :  { %v302_v30 = vpop.eup %301 }
 0x126   :  { %v212_v32 = vadd.f32 1.0, %v302_v30  ;;  %v215_v33 = vmul.f32 %v213_v29, %v197_v12 }
 0x128   :  { %v214_v34 = vmul.f32 0.5, %v212_v32  ;;  %v219_v35 = vadd.f32 %v217_v31, %v215_v33 }
 0x12a   :  { %v216_v37 = vmul.f32 %v214_v34, %v198_v17  ;;  %221 = vst [vmem:[#allocation9] sm:$0xff] %v219_v35 }
 0x12c   :  { %v220_v38 = vadd.f32 %v218_v36, %v216_v37 }
 0x12e   :  { %222 = vst [vmem:[#allocation9 + $0x8] sm:$0xff] %v220_v38 }
 0x12f   :  { %374 = shalt.err (!%p371_p5)
}
 0x130   :  { %234 = dma.vmem_to_hbm [thread:$0]  %s229_s7, 256, %s449_s4, [#allocation5], %s394_s1, %s394_s1, %s395_s30  }
 0x131   :  { %387 = dma.done.wait [#allocation5], 256  }
 0x132   :  { %388 = vsyncadd [#allocation5], 4294967040 }
 0x133   :  { %238 = vsyncpa [#allocation4], 1 }
 0x134   :  { %239 = vsyncpa [#allocation7], 1 }
 0x135   :  { %240 = vsyncpa [#allocation5], 1 }

</bundles_post_ra>
